<compile_context>
chip_gen: v7x
topology: tpu7x:2x2x1
jax: 0.10.0
libtpu: 0.0.40
codegen_flags: <defaults>
</compile_context>

<pallas_src>
import jax
import jax.numpy as jnp
from jax.experimental import pallas as pl
from jax.experimental.pallas import tpu as pltpu


def _actor_kernel(x_ref, w1t_ref, b1_ref, w2_ref, b2_ref, w3t_ref, b3_ref,
                  logp_ref):
    """One batch tile: state (TB, S) -> normalized log-probs (TB, A)."""
    x = x_ref[...]                                                     # (TB, S)

    # fc1 on the MXU (batch-major), then swap to the transposed layout
    # (features on sublanes, batch on the 128-wide lane axis) so the
    # tanh-heavy hidden work runs on fully packed vregs.
    pre1 = jnp.dot(x, w1t_ref[...], preferred_element_type=jnp.float32)  # (TB, H)
    h1t = jnp.tanh(pre1.T + b1_ref[...])                               # (H, TB)

    # fc2 + tanh, fully lane-dense.
    h2t = jnp.tanh(
        jnp.dot(w2_ref[...], h1t, preferred_element_type=jnp.float32)
        + b2_ref[...])                                                 # (H, TB)

    # fc3 + softmax tail back in batch-major so the store is already in the
    # module's (batch, action) layout -- no wrapper transpose pass afterwards.
    h2 = h2t.T                                                         # (TB, H)
    logits = (jnp.dot(h2, w3t_ref[...], preferred_element_type=jnp.float32)
              + b3_ref[...])                                           # (TB, A)

    # Categorical(logits): normalized log-probs (probs = exp(logp), exact).
    m = jnp.max(logits, axis=-1, keepdims=True)
    z = logits - m
    lse = jnp.log(jnp.sum(jnp.exp(z), axis=-1, keepdims=True))
    logp_ref[...] = z - lse                                            # (TB, A)


def _round_up(x, m):
    return (x + m - 1) // m * m


def discrete_actor_forward(state, params, *, batch_tile=4096):
    """Fused DiscreteActor forward.

    Args:
      state:  (B, state_size) float32, batch-major (as the nn.Module takes it).
      params: (w1, b1, w2, b2, w3, b3) in PyTorch layout,
              w: (out_features, in_features), b: (out_features,).
    Returns:
      log_probs: (B, action_size) float32 -- the normalized logits of
      torch.distributions.Categorical(logits=fc3(...)); probs = exp(log_probs).
    """
    w1, b1, w2, b2, w3, b3 = params
    B, S = state.shape
    H = w1.shape[0]
    A = w3.shape[0]

    # Batch tile on the 128-wide lane axis.  Big tiles amortize the ~0.35us
    # fixed per-grid-step overhead; when the batch spans more than one
    # 128-lane tile, keep >= 2 grid steps so v7x megacore can use both TCs.
    b128 = _round_up(B, 128)
    tb = min(batch_tile, b128)
    if b128 > 128:
        tb = min(tb, _round_up(pl.cdiv(b128, 2), 128))
    b_pad = _round_up(B, tb)
    grid = (b_pad // tb,)

    x = state.astype(jnp.float32)
    if b_pad != B:
        x = jnp.pad(x, ((0, b_pad - B), (0, 0)))

    # Tiny one-time weight re-layouts (kernel wants W1^T, W3^T and column/row
    # biases); negligible next to the state/output streams.
    w1t = w1.astype(jnp.float32).T               # (S, H)
    w2m = w2.astype(jnp.float32)                 # (H, H)
    w3t = w3.astype(jnp.float32).T               # (H, A)
    b1c = b1.astype(jnp.float32).reshape(H, 1)
    b2c = b2.astype(jnp.float32).reshape(H, 1)
    b3r = b3.astype(jnp.float32).reshape(1, A)

    resident = lambda a: pl.BlockSpec(a.shape, lambda i: (0, 0))

    logp = pl.pallas_call(
        _actor_kernel,
        grid=grid,
        in_specs=[
            pl.BlockSpec((tb, S), lambda i: (i, 0)),   # batch-major state tile
            resident(w1t), resident(b1c),              # weights stay VMEM-resident
            resident(w2m), resident(b2c),
            resident(w3t), resident(b3r),
        ],
        out_specs=pl.BlockSpec((tb, A), lambda i: (i, 0)),
        out_shape=jax.ShapeDtypeStruct((b_pad, A), jnp.float32),
        compiler_params=pltpu.CompilerParams(
            dimension_semantics=("parallel",),         # v7x: shard batch over 2 TCs
            vmem_limit_bytes=32 * 1024 * 1024,
        ),
    )(x, w1t, b1c, w2m, b2c, w3t, b3r)

    if b_pad != B:
        logp = logp[:B]
    return logp


def init_params(key, state_size, hidden_size, action_size):
    """nn.Linear-style init: U(-1/sqrt(fan_in), +1/sqrt(fan_in)).

    Weights use PyTorch layout (out_features, in_features); biases (out,).
    """
    def linear(k, fan_in, fan_out):
        kw, kb = jax.random.split(k)
        bound = 1.0 / jnp.sqrt(jnp.float32(fan_in))
        w = jax.random.uniform(kw, (fan_out, fan_in), jnp.float32, -bound, bound)
        b = jax.random.uniform(kb, (fan_out,), jnp.float32, -bound, bound)
        return w, b

    k1, k2, k3 = jax.random.split(key, 3)
    w1, b1 = linear(k1, state_size, hidden_size)
    w2, b2 = linear(k2, hidden_size, hidden_size)
    w3, b3 = linear(k3, hidden_size, action_size)
    return (w1, b1, w2, b2, w3, b3)


def _reference_forward(state, params):
    w1, b1, w2, b2, w3, b3 = params
    hp = jax.lax.Precision.HIGHEST          # keep the reference fully f32 on TPU
    h1 = jnp.tanh(jnp.dot(state, w1.T, precision=hp) + b1)
    h2 = jnp.tanh(jnp.dot(h1, w2.T, precision=hp) + b2)
    logits = jnp.dot(h2, w3.T, precision=hp) + b3
    return jax.nn.log_softmax(logits, axis=-1)


if __name__ == "__main__":
    key = jax.random.PRNGKey(0)
    k_params, k_state, k_state2 = jax.random.split(key, 3)

    STATE_SIZE = 4      # observation_space.shape[0]
    HIDDEN = 32         # hidden_size
    ACTIONS = 6         # action_space.n
    BATCH = 2

    params = init_params(k_params, STATE_SIZE, HIDDEN, ACTIONS)

    # Small demo batch (typical single RL step).
    state = jax.random.normal(k_state, (BATCH, STATE_SIZE), jnp.float32)
    logp = discrete_actor_forward(state, params)
    jax.block_until_ready(logp)

    ref_logp = _reference_forward(state, params)
    probs = jnp.exp(logp)                     # Categorical.probs
    assert logp.shape == (BATCH, ACTIONS)
    assert jnp.allclose(logp, ref_logp, atol=5e-4, rtol=5e-4)
    assert jnp.allclose(probs, jnp.exp(ref_logp), atol=5e-4, rtol=5e-4)
    assert jnp.allclose(jnp.sum(probs, axis=-1), 1.0, atol=1e-4)

    # Larger, non-multiple batch: exercises batch tiling (2 "parallel" grid
    # steps -> v7x megacore), VMEM-resident weights, and zero-padded tail rows.
    state2 = jax.random.normal(k_state2, (1000, STATE_SIZE), jnp.float32)
    logp2 = discrete_actor_forward(state2, params)
    jax.block_until_ready(logp2)
    ref_logp2 = _reference_forward(state2, params)
    assert logp2.shape == (1000, ACTIONS)
    assert jnp.allclose(logp2, ref_logp2, atol=5e-4, rtol=5e-4)
    assert jnp.allclose(jnp.sum(jnp.exp(logp2), axis=-1), 1.0, atol=1e-4)

    print("KERNEL_OK")
</pallas_src>

<mosaic_0001>
module attributes {stable_mosaic.version = 11 : i64} {
  func.func @_actor_kernel(%arg0: i32, %arg1: memref<128x4xf32, #tpu.memory_space<vmem>>, %arg2: memref<4x32xf32, #tpu.memory_space<vmem>>, %arg3: memref<32x1xf32, #tpu.memory_space<vmem>>, %arg4: memref<32x32xf32, #tpu.memory_space<vmem>>, %arg5: memref<32x1xf32, #tpu.memory_space<vmem>>, %arg6: memref<32x6xf32, #tpu.memory_space<vmem>>, %arg7: memref<1x6xf32, #tpu.memory_space<vmem>>, %arg8: memref<128x6xf32, #tpu.memory_space<vmem>>) attributes {dimension_semantics = [#tpu.dimension_semantics<parallel>], iteration_bounds = array<i64: 1>, scalar_prefetch = 0 : i64, scratch_operands = 0 : i64, tpu.core_type = #tpu.core_type<tc>, window_params = [{transform_indices = @transform_0, window_bounds = array<i64: 128, 4>}, {pipeline_mode = #tpu.pipeline_mode<synchronous>, transform_indices = @transform_1, window_bounds = array<i64: 4, 32>}, {pipeline_mode = #tpu.pipeline_mode<synchronous>, transform_indices = @transform_2, window_bounds = array<i64: 32, 1>}, {pipeline_mode = #tpu.pipeline_mode<synchronous>, transform_indices = @transform_3, window_bounds = array<i64: 32, 32>}, {pipeline_mode = #tpu.pipeline_mode<synchronous>, transform_indices = @transform_4, window_bounds = array<i64: 32, 1>}, {pipeline_mode = #tpu.pipeline_mode<synchronous>, transform_indices = @transform_5, window_bounds = array<i64: 32, 6>}, {pipeline_mode = #tpu.pipeline_mode<synchronous>, transform_indices = @transform_6, window_bounds = array<i64: 1, 6>}, {transform_indices = @transform_7, window_bounds = array<i64: 128, 6>}]} {
    %c0 = arith.constant 0 : index
    %c0_0 = arith.constant 0 : index
    %0 = vector.load %arg1[%c0, %c0_0] : memref<128x4xf32, #tpu.memory_space<vmem>>, vector<128x4xf32>
    %c0_1 = arith.constant 0 : index
    %c0_2 = arith.constant 0 : index
    %1 = vector.load %arg2[%c0_1, %c0_2] : memref<4x32xf32, #tpu.memory_space<vmem>>, vector<4x32xf32>
    %cst = arith.constant dense<0.000000e+00> : vector<128x32xf32>
    %2 = tpu.matmul %0, %1, %cst {dimension_numbers = #tpu.dot_dimension_numbers<[1], [0], [0], [1], [0, 0, 1, 1], [], []>} : vector<128x4xf32>, vector<4x32xf32>, vector<128x32xf32> -> vector<128x32xf32>
    %3 = tpu.transpose %2, [1, 0] : vector<128x32xf32> -> vector<32x128xf32>
    %c0_3 = arith.constant 0 : index
    %c0_4 = arith.constant 0 : index
    %4 = vector.load %arg3[%c0_3, %c0_4] : memref<32x1xf32, #tpu.memory_space<vmem>>, vector<32x1xf32>
    %5 = vector.broadcast %4 : vector<32x1xf32> to vector<32x128xf32>
    %6 = arith.addf %3, %5 : vector<32x128xf32>
    %7 = math.tanh %6 : vector<32x128xf32>
    %c0_5 = arith.constant 0 : index
    %c0_6 = arith.constant 0 : index
    %8 = vector.load %arg4[%c0_5, %c0_6] : memref<32x32xf32, #tpu.memory_space<vmem>>, vector<32x32xf32>
    %cst_7 = arith.constant dense<0.000000e+00> : vector<32x128xf32>
    %9 = tpu.matmul %8, %7, %cst_7 {dimension_numbers = #tpu.dot_dimension_numbers<[1], [0], [0], [1], [0, 0, 1, 1], [], []>} : vector<32x32xf32>, vector<32x128xf32>, vector<32x128xf32> -> vector<32x128xf32>
    %c0_8 = arith.constant 0 : index
    %c0_9 = arith.constant 0 : index
    %10 = vector.load %arg5[%c0_8, %c0_9] : memref<32x1xf32, #tpu.memory_space<vmem>>, vector<32x1xf32>
    %11 = vector.broadcast %10 : vector<32x1xf32> to vector<32x128xf32>
    %12 = arith.addf %9, %11 : vector<32x128xf32>
    %13 = math.tanh %12 : vector<32x128xf32>
    %14 = tpu.transpose %13, [1, 0] : vector<32x128xf32> -> vector<128x32xf32>
    %c0_10 = arith.constant 0 : index
    %c0_11 = arith.constant 0 : index
    %15 = vector.load %arg6[%c0_10, %c0_11] : memref<32x6xf32, #tpu.memory_space<vmem>>, vector<32x6xf32>
    %cst_12 = arith.constant dense<0.000000e+00> : vector<128x6xf32>
    %16 = tpu.matmul %14, %15, %cst_12 {dimension_numbers = #tpu.dot_dimension_numbers<[1], [0], [0], [1], [0, 0, 1, 1], [], []>} : vector<128x32xf32>, vector<32x6xf32>, vector<128x6xf32> -> vector<128x6xf32>
    %c0_13 = arith.constant 0 : index
    %c0_14 = arith.constant 0 : index
    %17 = vector.load %arg7[%c0_13, %c0_14] : memref<1x6xf32, #tpu.memory_space<vmem>>, vector<1x6xf32>
    %18 = vector.broadcast %17 : vector<1x6xf32> to vector<128x6xf32>
    %19 = arith.addf %16, %18 : vector<128x6xf32>
    %cst_15 = arith.constant dense<0xFF800000> : vector<128xf32>
    %20 = vector.multi_reduction <maximumf>, %19, %cst_15 [1] : vector<128x6xf32> to vector<128xf32>
    %21 = vector.shape_cast %20 : vector<128xf32> to vector<128x1xf32>
    %22 = vector.broadcast %21 : vector<128x1xf32> to vector<128x6xf32>
    %23 = arith.subf %19, %22 : vector<128x6xf32>
    %24 = math.exp %23 : vector<128x6xf32>
    %cst_16 = arith.constant dense<0.000000e+00> : vector<128xf32>
    %25 = vector.multi_reduction <add>, %24, %cst_16 [1] : vector<128x6xf32> to vector<128xf32>
    %26 = vector.shape_cast %25 : vector<128xf32> to vector<128x1xf32>
    %27 = math.log %26 : vector<128x1xf32>
    %28 = vector.broadcast %27 : vector<128x1xf32> to vector<128x6xf32>
    %29 = arith.subf %23, %28 : vector<128x6xf32>
    %c0_17 = arith.constant 0 : index
    %c0_18 = arith.constant 0 : index
    %30 = vector.load %arg8[%c0_17, %c0_18] : memref<128x6xf32, #tpu.memory_space<vmem>>, vector<128x6xf32>
    tpu.vector_store %arg8[%c0_17, %c0_18], %29 {strides = array<i32>} : memref<128x6xf32, #tpu.memory_space<vmem>>, vector<128x6xf32>,
    return
  }
  func.func @transform_0(%arg0: i32) -> (i32, i32) {
    %c0_i32 = arith.constant 0 : i32
    %c0_i32_0 = arith.constant 0 : i32
    return %arg0, %c0_i32 : i32, i32
  }
  func.func @transform_1(%arg0: i32) -> (i32, i32) {
    %c0_i32 = arith.constant 0 : i32
    %c0_i32_0 = arith.constant 0 : i32
    %c0_i32_1 = arith.constant 0 : i32
    return %c0_i32, %c0_i32_0 : i32, i32
  }
  func.func @transform_2(%arg0: i32) -> (i32, i32) {
    %c0_i32 = arith.constant 0 : i32
    %c0_i32_0 = arith.constant 0 : i32
    %c0_i32_1 = arith.constant 0 : i32
    return %c0_i32, %c0_i32_0 : i32, i32
  }
  func.func @transform_3(%arg0: i32) -> (i32, i32) {
    %c0_i32 = arith.constant 0 : i32
    %c0_i32_0 = arith.constant 0 : i32
    %c0_i32_1 = arith.constant 0 : i32
    return %c0_i32, %c0_i32_0 : i32, i32
  }
  func.func @transform_4(%arg0: i32) -> (i32, i32) {
    %c0_i32 = arith.constant 0 : i32
    %c0_i32_0 = arith.constant 0 : i32
    %c0_i32_1 = arith.constant 0 : i32
    return %c0_i32, %c0_i32_0 : i32, i32
  }
  func.func @transform_5(%arg0: i32) -> (i32, i32) {
    %c0_i32 = arith.constant 0 : i32
    %c0_i32_0 = arith.constant 0 : i32
    %c0_i32_1 = arith.constant 0 : i32
    return %c0_i32, %c0_i32_0 : i32, i32
  }
  func.func @transform_6(%arg0: i32) -> (i32, i32) {
    %c0_i32 = arith.constant 0 : i32
    %c0_i32_0 = arith.constant 0 : i32
    %c0_i32_1 = arith.constant 0 : i32
    return %c0_i32, %c0_i32_0 : i32, i32
  }
  func.func @transform_7(%arg0: i32) -> (i32, i32) {
    %c0_i32 = arith.constant 0 : i32
    %c0_i32_0 = arith.constant 0 : i32
    return %arg0, %c0_i32 : i32, i32
  }
}

</mosaic_0001>

<bundles_post_ra>
// kernel: tpu_custom_call.1
= control target key start
LH: loop header
LB: loop body
LE: loop exit
PB: predicated region body
PF: predicated region fallthrough
CT: control target
= control target key end

     0   :  { %vm92_vm0 = vcmask 1043456   ;;  %vm43_vm1 = vcmask 31744   ;;  %v1139_v3 = vmov 0   ;;  %vm333_vm2 = vcmask 261120   ;;  %s1542_s1 = inlined_call_operand.vmem [shape: f32[4,32], index: 1, kind: input, shape index: {}]   ;;  %s1543_s0 = inlined_call_operand.vmem [shape: f32[128,4], index: 0, kind: input, shape index: {}]   ;;  %s1544_s2 = inlined_call_operand.vmem [shape: f32[32,1], index: 2, kind: input, shape index: {}]   ;;  %s1545_s4 = inlined_call_operand.vmem [shape: f32[32,1], index: 4, kind: input, shape index: {}]   ;;  %s1546_s3 = inlined_call_operand.vmem [shape: f32[32,32], index: 3, kind: input, shape index: {}]   ;;  %s1547_s5 = inlined_call_operand.vmem [shape: f32[32,6], index: 5, kind: input, shape index: {}]   ;;  %s1548_s6 = inlined_call_operand.vmem [shape: f32[1,6], index: 6, kind: input, shape index: {}]   ;;  %s1549_s7 = inlined_call_operand.vmem [shape: f32[128,6], index: 7, kind: output, shape index: {}]  }
   0x1   :  { %v42_v0 = vld [vmem:[%s1542_s1] sm:$0xf]  ;;  %v27_v2 = vld [vmem:[%s1543_s0 + $0x8] sm:$0xff]  ;;  %1057 = vset.pattern.permute.xlu0 %v1139_v3  ;;  %1058 = vset.pattern.permute.xlu1 %v1139_v3  ;;  %v28_v4 = vld [vmem:[%s1543_s0 + $0x10] sm:$0xff]  ;;  %vm671_vm3 = vcmask 48128  }
   0x2   :  { %v26_v1 = vld [vmem:[%s1543_s0] sm:$0xff]  ;;  %967 = vmatprep.subr.msk.mxu0 %vm92_vm0, %v42_v0  ;;  %v29_v5 = vld [vmem:[%s1543_s0 + $0x18] sm:$0xff]  ;;  %v275_v8 = vld [vmem:[%s1544_s2 + $0x10] sm:$0xff] }
   0x3   :  { %969 = vmatprep.mubr.msk.f32.mxu0 %vm43_vm1, %v26_v1  ;;  %968 = vmatpush3.msk.msra.mxu0 %vm92_vm0, %v42_v0  ;;  %v30_v6 = vld [vmem:[%s1543_s0 + $0x20] sm:$0xff]  ;;  %v274_v9 = vld [vmem:[%s1544_s2 + $0x8] sm:$0xff]  ;;  %v32_v11 = vld [vmem:[%s1543_s0 + $0x30] sm:$0xff] }
   0x4   :  { %970 = vmatmul.mubr.msk.f32.vlgmr.msra.gmra.mrb[0].mxu0 %vm43_vm1, %v27_v2  ;;  %v273_v7 = vld [vmem:[%s1544_s2] sm:$0xff]  ;;  %289 = vperm.xlu1 %1058, %v275_v8   ;;  %v31_v10 = vld [vmem:[%s1543_s0 + $0x28] sm:$0xff]  ;;  %v33_v12 = vld [vmem:[%s1543_s0 + $0x38] sm:$0xff] }
   0x5   :  { %972 = vmatprep.mubr.msk.f32.mxu0 %vm43_vm1, %v28_v4  ;;  %279 = vperm.xlu0 %1057, %v273_v7   ;;  %v34_v13 = vld [vmem:[%s1543_s0 + $0x40] sm:$0xff]  ;;  %v35_v14 = vld [vmem:[%s1543_s0 + $0x48] sm:$0xff]  ;;  %v36_v15 = vld [vmem:[%s1543_s0 + $0x50] sm:$0xff] }
   0x6   :  { %v37_v16 = vld [vmem:[%s1543_s0 + $0x58] sm:$0xff]  ;;  %v38_v17 = vld [vmem:[%s1543_s0 + $0x60] sm:$0xff]  ;;  %v39_v18 = vld [vmem:[%s1543_s0 + $0x68] sm:$0xff] }
   0x7   :  { %v40_v19 = vld [vmem:[%s1543_s0 + $0x70] sm:$0xff]  ;;  %v41_v20 = vld [vmem:[%s1543_s0 + $0x78] sm:$0xff]  ;;  %v309_v22 = vld [vmem:[%s1545_s4] sm:$0xff] }
   0x8   :  { %973 = vmatmul.mubr.msk.f32.gmra.mrb[2].mxu0 %vm43_vm1, %v29_v5  ;;  %v276_v21 = vld [vmem:[%s1544_s2 + $0x18] sm:$0xff]  ;;  %v310_v23 = vld [vmem:[%s1545_s4 + $0x8] sm:$0xff]  ;;  %v311_v24 = vld [vmem:[%s1545_s4 + $0x10] sm:$0xff] }
   0x9   :  { %975 = vmatprep.mubr.msk.f32.mxu0 %vm43_vm1, %v30_v6  ;;  %284 = vperm.xlu0 %1057, %v274_v9   ;;  %v312_v25 = vld [vmem:[%s1545_s4 + $0x18] sm:$0xff]  ;;  %v305_v42 = vld [vmem:[%s1546_s3] sm:$0xff]  ;;  %v306_v61 = vld [vmem:[%s1546_s3 + $0x8] sm:$0xff] }
   0xa   :  { %294 = vperm.xlu1 %1058, %v276_v21   ;;  %v307_v62 = vld [vmem:[%s1546_s3 + $0x10] sm:$0xff]  ;;  %v308_v63 = vld [vmem:[%s1546_s3 + $0x18] sm:$0xff]  ;;  %v467_v0 = vld [vmem:[%s1547_s5] sm:$0xff] }
   0xb   :  { %v468_v1 = vld [vmem:[%s1547_s5 + $0x8] sm:$0xff] }
   0xc   :  { %976 = vmatmul.mubr.msk.f32.gmra.mrb[4].mxu0 %vm43_vm1, %v31_v10  ;;  %v1047_v2 = vpack.c.bf16 %v468_v1, %v467_v0 }
   0xd   :  { %978 = vmatprep.mubr.msk.f32.mxu0 %vm43_vm1, %v32_v11 }
   0xe   :  { %315 = vperm.xlu1 %1058, %v309_v22   ;;  %1048 = vmatprep.subr.bf16.mxu1 %v1047_v2 }
   0xf   :  { %1050 = vmatpush3.bf16.msra.mxu1 %v1047_v2 }
  0x10   :  { %979 = vmatmul.mubr.msk.f32.gmra.mrb[6].mxu0 %vm43_vm1, %v33_v12 }
  0x11   :  { %981 = vmatprep.mubr.msk.f32.mxu0 %vm43_vm1, %v34_v13 }
  0x12   :  { %320 = vperm.xlu1 %1058, %v310_v23  }
  0x14   :  { %982 = vmatmul.mubr.msk.f32.gmra.mrb[8].mxu0 %vm43_vm1, %v35_v14 }
  0x15   :  { %984 = vmatprep.mubr.msk.f32.mxu0 %vm43_vm1, %v36_v15  ;;  %v469_v15 = vld [vmem:[%s1547_s5 + $0x10] sm:$0xff] }
  0x16   :  { %325 = vperm.xlu1 %1058, %v311_v24  }
  0x18   :  { %985 = vmatmul.mubr.msk.f32.gmra.mrb[10].mxu0 %vm43_vm1, %v37_v16  ;;  %v470_v16 = vld [vmem:[%s1547_s5 + $0x18] sm:$0xff] }
  0x19   :  { %987 = vmatprep.mubr.msk.f32.mxu0 %vm43_vm1, %v38_v17 }
  0x1a   :  { %330 = vperm.xlu1 %1058, %v312_v25  }
  0x1c   :  { %988 = vmatmul.mubr.msk.f32.gmra.mrb[12].mxu0 %vm43_vm1, %v39_v18  ;;  %v1051_v18 = vpack.c.bf16 %v470_v16, %v469_v15 }
  0x1d   :  { %990 = vmatprep.mubr.msk.f32.mxu0 %vm43_vm1, %v40_v19 }
  0x1e   :  { %1052 = vmatprep.subr.bf16.mxu1 %v1051_v18 }
  0x1f   :  { %1054 = vmatpush3.bf16.msra.mxu1 %v1051_v18 }
  0x20   :  { %991 = vmatmul.mubr.msk.f32.gmra.mrb[14].mxu0 %vm43_vm1, %v41_v20 }
  0x21   :  { %1001 = vmatprep.mubr.msk.f32.mxu0 %vm333_vm2, %v305_v42 }
  0x83   :  { %v290_v49 = vpop.permute.xlu1 %289 }
  0x84   :  { %v280_v43 = vpop.permute.xlu0 %279 }
  0x88   :  { %v285_v44 = vpop.permute.xlu0 %284 }
  0x89   :  { %v295_v52 = vpop.permute.xlu1 %294 }
  0x8d   :  { %v316_v3 = vpop.permute.xlu1 %315 }
  0x91   :  { %v321_v4 = vpop.permute.xlu1 %320 }
  0x95   :  { %v326_v10 = vpop.permute.xlu1 %325 }
  0x99   :  { %v331_v13 = vpop.permute.xlu1 %330 }
  0xd7   :  { %v971_v26 = vpop.f32.mrb[0].mxu0 }
  0xd8   :  { %v162_v27 = vpop.f32.mrb[1].mxu0 }
  0xd9   :  { %241 = vxpose.xlu0.b32.start [1/16] (narrow) %v162_v27, 32 }
  0xdb   :  { %v974_v28 = vpop.f32.mrb[2].mxu0 }
  0xdc   :  { %v172_v29 = vpop.f32.mrb[3].mxu0 }
  0xdd   :  { %242 = vxpose.xlu0.b32.cont [2/16] (narrow) %v971_v26, 32 }
  0xdf   :  { %v977_v30 = vpop.f32.mrb[4].mxu0 }
  0xe0   :  { %v182_v31 = vpop.f32.mrb[5].mxu0 }
  0xe1   :  { %243 = vxpose.xlu0.b32.cont [3/16] (narrow) %v172_v29, 32 }
  0xe3   :  { %v980_v32 = vpop.f32.mrb[6].mxu0 }
  0xe4   :  { %v192_v33 = vpop.f32.mrb[7].mxu0 }
  0xe5   :  { %244 = vxpose.xlu0.b32.cont [4/16] (narrow) %v974_v28, 32 }
  0xe7   :  { %v983_v34 = vpop.f32.mrb[8].mxu0 }
  0xe8   :  { %v202_v35 = vpop.f32.mrb[9].mxu0 }
  0xe9   :  { %245 = vxpose.xlu0.b32.cont [5/16] (narrow) %v182_v31, 32 }
  0xeb   :  { %v986_v36 = vpop.f32.mrb[10].mxu0 }
  0xec   :  { %v212_v37 = vpop.f32.mrb[11].mxu0 }
  0xed   :  { %246 = vxpose.xlu0.b32.cont [6/16] (narrow) %v977_v30, 32 }
  0xef   :  { %v989_v38 = vpop.f32.mrb[12].mxu0 }
  0xf0   :  { %v222_v39 = vpop.f32.mrb[13].mxu0 }
  0xf1   :  { %247 = vxpose.xlu0.b32.cont [7/16] (narrow) %v192_v33, 32 }
  0xf3   :  { %v992_v40 = vpop.f32.mrb[14].mxu0 }
  0xf4   :  { %v232_v41 = vpop.f32.mrb[15].mxu0 }
  0xf5   :  { %248 = vxpose.xlu0.b32.cont [8/16] (narrow) %v980_v32, 32 }
  0xf9   :  { %249 = vxpose.xlu0.b32.cont [9/16] (narrow) %v202_v35, 32 }
  0xfd   :  { %250 = vxpose.xlu0.b32.cont [10/16] (narrow) %v983_v34, 32 }
 0x101   :  { %251 = vxpose.xlu0.b32.cont [11/16] (narrow) %v212_v37, 32 }
 0x105   :  { %252 = vxpose.xlu0.b32.cont [12/16] (narrow) %v986_v36, 32 }
 0x109   :  { %253 = vxpose.xlu0.b32.cont [13/16] (narrow) %v222_v39, 32 }
 0x10d   :  { %254 = vxpose.xlu0.b32.cont [14/16] (narrow) %v989_v38, 32  ;;  %v905_v38 = vld [vmem:[%s1548_s6] ss:$0 sm:$0xff] }
 0x111   :  { %255 = vxpose.xlu0.b32.cont [15/16] (narrow) %v232_v41, 32 }
 0x115   :  { %256 = vxpose.xlu0.b32.end [16/16] (narrow) %v992_v40, 32 }
 0x159   :  { %v257_v45 = vpop.trf.xlu0 }
 0x15a   :  { %v297_v46 = vadd.f32 %v280_v43, %v257_v45 }
 0x15c   :  { %1059 = vtanh.f32 %v297_v46 }
 0x15d   :  { %v258_v47 = vpop.trf.xlu0 }
 0x15e   :  { %v298_v48 = vadd.f32 %v285_v44, %v258_v47 }
 0x160   :  { %1061 = vtanh.f32 %v298_v48 }
 0x161   :  { %v259_v50 = vpop.trf.xlu0 }
 0x162   :  { %v299_v51 = vadd.f32 %v290_v49, %v259_v50 }
 0x164   :  { %1063 = vtanh.f32 %v299_v51 }
 0x165   :  { %v260_v53 = vpop.trf.xlu0 }
 0x166   :  { %v300_v54 = vadd.f32 %v295_v52, %v260_v53  ;;  %v1060_v55 = vpop.eup %1059 }
 0x168   :  { %1065 = vtanh.f32 %v300_v54 }
 0x16a   :  { %v1062_v56 = vpop.eup %1061 }
 0x16b   :  { %v1039_v57 = vpack.c.bf16 %v1062_v56, %v1060_v55 }
 0x16d   :  { %1040 = vmatprep.subr.bf16.mxu0 %v1039_v57 }
 0x16e   :  { %1042 = vmatpush3.bf16.msra.mxu0 %v1039_v57  ;;  %v1064_v58 = vpop.eup %1063 }
 0x172   :  { %v1066_v59 = vpop.eup %1065 }
 0x173   :  { %v1043_v60 = vpack.c.bf16 %v1066_v59, %v1064_v58 }
 0x175   :  { %1044 = vmatprep.subr.bf16.mxu0 %v1043_v60 }
 0x176   :  { %1046 = vmatpush3.bf16.msra.mxu0 %v1043_v60 }
 0x179   :  { %1002 = vmatmul.mubr.msk.f32.vlgmr.msra.gmra.mrb[16].mxu0 %vm333_vm2, %v306_v61 }
 0x17a   :  { %1004 = vmatprep.mubr.msk.f32.mxu0 %vm333_vm2, %v307_v62 }
 0x17d   :  { %1005 = vmatmul.mubr.msk.f32.gmra.mrb[18].mxu0 %vm333_vm2, %v308_v63 }
 0x24c   :  { %v1003_v5 = vpop.f32.mrb[16].mxu0 }
 0x24d   :  { %v412_v6 = vpop.f32.mrb[17].mxu0  ;;  %v418_v8 = vadd.f32 %v1003_v5, %v321_v4 }
 0x24e   :  { %v413_v7 = vadd.f32 %v412_v6, %v316_v3 }
 0x250   :  { %1067 = vtanh.f32 %v413_v7  ;;  %v1006_v9 = vpop.f32.mrb[18].mxu0 }
 0x251   :  { %v422_v11 = vpop.f32.mrb[19].mxu0  ;;  %1069 = vtanh.f32 %v418_v8  ;;  %v428_v14 = vadd.f32 %v1006_v9, %v331_v13 }
 0x252   :  { %v423_v12 = vadd.f32 %v422_v11, %v326_v10 }
 0x254   :  { %1071 = vtanh.f32 %v423_v12 }
 0x255   :  { %1073 = vtanh.f32 %v428_v14 }
 0x25a   :  { %v1068_v17 = vpop.eup %1067 }
 0x25b   :  { %435 = vxpose.xlu1.b32.start [1/4] (short) %v1068_v17, 128  ;;  %v1070_v19 = vpop.eup %1069 }
 0x25e   :  { %v1072_v20 = vpop.eup %1071 }
 0x25f   :  { %436 = vxpose.xlu1.b32.cont [2/4] (short) %v1070_v19, 128  ;;  %v1074_v21 = vpop.eup %1073 }
 0x263   :  { %437 = vxpose.xlu1.b32.cont [3/4] (short) %v1072_v20, 128 }
 0x267   :  { %438 = vxpose.xlu1.b32.end [4/4] (short) %v1074_v21, 128 }
 0x2db   :  { %v451_v22 = vpop.trf.xlu1 }
 0x2dc   :  { %1015 = vmatprep.mubr.msk.f32.mxu1 %vm333_vm2, %v451_v22 }
 0x2df   :  { %v452_v23 = vpop.trf.xlu1 }
 0x2e0   :  { %1016 = vmatmul.mubr.msk.f32.vlgmr.msra.gmra.mrb[0].mxu1 %vm333_vm2, %v452_v23 }
 0x2e3   :  { %v453_v24 = vpop.trf.xlu1 }
 0x2e4   :  { %1018 = vmatprep.mubr.msk.f32.mxu1 %vm333_vm2, %v453_v24 }
 0x2e7   :  { %v454_v25 = vpop.trf.xlu1 }
 0x2e8   :  { %1019 = vmatmul.mubr.msk.f32.gmra.mrb[2].mxu1 %vm333_vm2, %v454_v25 }
 0x2eb   :  { %v455_v26 = vpop.trf.xlu1 }
 0x2ec   :  { %1021 = vmatprep.mubr.msk.f32.mxu1 %vm333_vm2, %v455_v26 }
 0x2ef   :  { %v456_v27 = vpop.trf.xlu1 }
 0x2f0   :  { %1022 = vmatmul.mubr.msk.f32.gmra.mrb[4].mxu1 %vm333_vm2, %v456_v27 }
 0x2f3   :  { %v457_v28 = vpop.trf.xlu1 }
 0x2f4   :  { %1024 = vmatprep.mubr.msk.f32.mxu1 %vm333_vm2, %v457_v28 }
 0x2f7   :  { %v458_v29 = vpop.trf.xlu1 }
 0x2f8   :  { %1025 = vmatmul.mubr.msk.f32.gmra.mrb[6].mxu1 %vm333_vm2, %v458_v29 }
 0x2fb   :  { %v459_v30 = vpop.trf.xlu1 }
 0x2fc   :  { %1027 = vmatprep.mubr.msk.f32.mxu1 %vm333_vm2, %v459_v30 }
 0x2ff   :  { %v460_v31 = vpop.trf.xlu1 }
 0x300   :  { %1028 = vmatmul.mubr.msk.f32.gmra.mrb[8].mxu1 %vm333_vm2, %v460_v31 }
 0x303   :  { %v461_v32 = vpop.trf.xlu1 }
 0x304   :  { %1030 = vmatprep.mubr.msk.f32.mxu1 %vm333_vm2, %v461_v32 }
 0x307   :  { %v462_v33 = vpop.trf.xlu1 }
 0x308   :  { %1031 = vmatmul.mubr.msk.f32.gmra.mrb[10].mxu1 %vm333_vm2, %v462_v33 }
 0x30b   :  { %v463_v34 = vpop.trf.xlu1 }
 0x30c   :  { %1033 = vmatprep.mubr.msk.f32.mxu1 %vm333_vm2, %v463_v34 }
 0x30f   :  { %v464_v35 = vpop.trf.xlu1 }
 0x310   :  { %1034 = vmatmul.mubr.msk.f32.gmra.mrb[12].mxu1 %vm333_vm2, %v464_v35 }
 0x313   :  { %v465_v36 = vpop.trf.xlu1 }
 0x314   :  { %1036 = vmatprep.mubr.msk.f32.mxu1 %vm333_vm2, %v465_v36 }
 0x317   :  { %v466_v37 = vpop.trf.xlu1 }
 0x318   :  { %1037 = vmatmul.mubr.msk.f32.gmra.mrb[14].mxu1 %vm333_vm2, %v466_v37 }
 0x3b3   :  { %v1017_v39 = vpop.f32.mrb[0].mxu1 }
 0x3b4   :  { %v1318_v40 = vadd.f32 %v1017_v39, %v905_v38  ;;  %v592_v41 = vpop.f32.mrb[1].mxu1 }
 0x3b5   :  { %v1320_v42 = vadd.f32 %v905_v38, %v592_v41 }
 0x3b6   :  { %v675_v43 = vsel %vm671_vm3, %v1318_v40, -inf }
 0x3b7   :  { %676 = vmax.xlane.f32.xlu0 %v675_v43  ;;  %v672_v44 = vsel %vm671_vm3, %v1320_v42, -inf }
 0x3b8   :  { %673 = vmax.xlane.f32.xlu1 %v672_v44 }
 0x3bb   :  { %v1020_v45 = vpop.f32.mrb[2].mxu1 }
 0x3bc   :  { %v1326_v46 = vadd.f32 %v1020_v45, %v905_v38  ;;  %v602_v47 = vpop.f32.mrb[3].mxu1 }
 0x3bd   :  { %v1330_v49 = vadd.f32 %v905_v38, %v602_v47 }
 0x3be   :  { %v681_v48 = vsel %vm671_vm3, %v1326_v46, -inf }
 0x3bf   :  { %682 = vmax.xlane.f32.xlu0 %v681_v48  ;;  %v678_v50 = vsel %vm671_vm3, %v1330_v49, -inf }
 0x3c3   :  { %679 = vmax.xlane.f32.xlu0 %v678_v50  ;;  %v1023_v51 = vpop.f32.mrb[4].mxu1 }
 0x3c4   :  { %v1334_v52 = vadd.f32 %v1023_v51, %v905_v38  ;;  %v612_v53 = vpop.f32.mrb[5].mxu1 }
 0x3c5   :  { %v1338_v55 = vadd.f32 %v905_v38, %v612_v53 }
 0x3c6   :  { %v687_v54 = vsel %vm671_vm3, %v1334_v52, -inf }
 0x3c7   :  { %688 = vmax.xlane.f32.xlu0 %v687_v54  ;;  %v684_v56 = vsel %vm671_vm3, %v1338_v55, -inf }
 0x3cb   :  { %685 = vmax.xlane.f32.xlu0 %v684_v56  ;;  %v1026_v57 = vpop.f32.mrb[6].mxu1 }
 0x3cc   :  { %v1342_v58 = vadd.f32 %v1026_v57, %v905_v38  ;;  %v622_v59 = vpop.f32.mrb[7].mxu1 }
 0x3cd   :  { %v1346_v61 = vadd.f32 %v905_v38, %v622_v59 }
 0x3ce   :  { %v693_v60 = vsel %vm671_vm3, %v1342_v58, -inf }
 0x3cf   :  { %694 = vmax.xlane.f32.xlu0 %v693_v60  ;;  %v690_v62 = vsel %vm671_vm3, %v1346_v61, -inf }
 0x3d3   :  { %691 = vmax.xlane.f32.xlu0 %v690_v62  ;;  %v1029_v63 = vpop.f32.mrb[8].mxu1 }
 0x3d4   :  { %v1350_v0 = vadd.f32 %v1029_v63, %v905_v38  ;;  %v632_v1 = vpop.f32.mrb[9].mxu1 }
 0x3d5   :  { %v1352_v2 = vadd.f32 %v905_v38, %v632_v1 }
 0x3d6   :  { %v699_v3 = vsel %vm671_vm3, %v1350_v0, -inf }
 0x3d7   :  { %700 = vmax.xlane.f32.xlu0 %v699_v3  ;;  %v696_v4 = vsel %vm671_vm3, %v1352_v2, -inf }
 0x3d8   :  { %697 = vmax.xlane.f32.xlu1 %v696_v4 }
 0x3db   :  { %v1032_v5 = vpop.f32.mrb[10].mxu1 }
 0x3dc   :  { %v1358_v6 = vadd.f32 %v1032_v5, %v905_v38  ;;  %v642_v7 = vpop.f32.mrb[11].mxu1 }
 0x3dd   :  { %v1360_v8 = vadd.f32 %v905_v38, %v642_v7 }
 0x3de   :  { %v705_v9 = vsel %vm671_vm3, %v1358_v6, -inf }
 0x3df   :  { %706 = vmax.xlane.f32.xlu0 %v705_v9  ;;  %v702_v10 = vsel %vm671_vm3, %v1360_v8, -inf }
 0x3e0   :  { %703 = vmax.xlane.f32.xlu1 %v702_v10 }
 0x3e3   :  { %v1035_v11 = vpop.f32.mrb[12].mxu1 }
 0x3e4   :  { %v1366_v12 = vadd.f32 %v1035_v11, %v905_v38  ;;  %v652_v13 = vpop.f32.mrb[13].mxu1 }
 0x3e5   :  { %v1368_v14 = vadd.f32 %v905_v38, %v652_v13 }
 0x3e6   :  { %v711_v15 = vsel %vm671_vm3, %v1366_v12, -inf }
 0x3e7   :  { %712 = vmax.xlane.f32.xlu0 %v711_v15  ;;  %v708_v16 = vsel %vm671_vm3, %v1368_v14, -inf }
 0x3e8   :  { %709 = vmax.xlane.f32.xlu1 %v708_v16 }
 0x3eb   :  { %v1038_v17 = vpop.f32.mrb[14].mxu1 }
 0x3ec   :  { %v1374_v18 = vadd.f32 %v1038_v17, %v905_v38  ;;  %v662_v19 = vpop.f32.mrb[15].mxu1 }
 0x3ed   :  { %v1376_v20 = vadd.f32 %v905_v38, %v662_v19 }
 0x3ee   :  { %v717_v21 = vsel %vm671_vm3, %v1374_v18, -inf }
 0x3ef   :  { %718 = vmax.xlane.f32.xlu0 %v717_v21  ;;  %v714_v22 = vsel %vm671_vm3, %v1376_v20, -inf }
 0x3f0   :  { %715 = vmax.xlane.f32.xlu1 %v714_v22 }
 0x444   :  { %v677_v23 = vpop.xlane.xlu0 %676 }
 0x445   :  { %v1383_v24 = vsub.f32 %v1318_v40, %v677_v23  ;;  %v674_v25 = vpop.xlane.xlu1 %673 }
 0x446   :  { %v1386_v26 = vsub.f32 %v1320_v42, %v674_v25 }
 0x447   :  { %v738_v27 = vmul.f32 1.442695, %v1383_v24 }
 0x448   :  { %v736_v28 = vmul.f32 1.442695, %v1386_v26 }
 0x449   :  { %1075 = vpow2.f32 %v738_v27 }
 0x44a   :  { %1077 = vpow2.f32 %v736_v28 }
 0x44c   :  { %v683_v29 = vpop.xlane.xlu0 %682 }
 0x44d   :  { %v1391_v30 = vsub.f32 %v1326_v46, %v683_v29 }
 0x44f   :  { %v742_v31 = vmul.f32 1.442695, %v1391_v30 }
 0x450   :  { %v680_v32 = vpop.xlane.xlu0 %679 }
 0x451   :  { %1079 = vpow2.f32 %v742_v31  ;;  %v1395_v33 = vsub.f32 %v1330_v49, %v680_v32 }
 0x453   :  { %v1076_v34 = vpop.eup %1075  ;;  %v740_v35 = vmul.f32 1.442695, %v1395_v33 }
 0x454   :  { %v1078_v36 = vpop.eup %1077  ;;  %v689_v37 = vpop.xlane.xlu0 %688  ;;  %v771_v38 = vsel %vm671_vm3, %v1076_v34, 0.0 }
 0x455   :  { %1081 = vpow2.f32 %v740_v35  ;;  %v1400_v39 = vsub.f32 %v1334_v52, %v689_v37  ;;  %772 = vadd.xlane.f32.xlu0 %v771_v38  ;;  %v768_v40 = vsel %vm671_vm3, %v1078_v36, 0.0 }
 0x456   :  { %769 = vadd.xlane.f32.xlu1 %v768_v40 }
 0x457   :  { %v746_v41 = vmul.f32 1.442695, %v1400_v39 }
 0x458   :  { %v686_v42 = vpop.xlane.xlu0 %685 }
 0x459   :  { %1083 = vpow2.f32 %v746_v41  ;;  %v1405_v43 = vsub.f32 %v1338_v55, %v686_v42 }
 0x45b   :  { %v1080_v44 = vpop.eup %1079  ;;  %v744_v45 = vmul.f32 1.442695, %v1405_v43 }
 0x45c   :  { %v695_v46 = vpop.xlane.xlu0 %694  ;;  %v777_v47 = vsel %vm671_vm3, %v1080_v44, 0.0 }
 0x45d   :  { %1085 = vpow2.f32 %v744_v45  ;;  %v1410_v48 = vsub.f32 %v1342_v58, %v695_v46  ;;  %778 = vadd.xlane.f32.xlu0 %v777_v47 }
 0x45f   :  { %v1082_v49 = vpop.eup %1081  ;;  %v750_v50 = vmul.f32 1.442695, %v1410_v48 }
 0x460   :  { %v692_v51 = vpop.xlane.xlu0 %691  ;;  %v774_v52 = vsel %vm671_vm3, %v1082_v49, 0.0 }
 0x461   :  { %1087 = vpow2.f32 %v750_v50  ;;  %v1415_v53 = vsub.f32 %v1346_v61, %v692_v51  ;;  %775 = vadd.xlane.f32.xlu1 %v774_v52 }
 0x463   :  { %v1084_v54 = vpop.eup %1083  ;;  %v748_v55 = vmul.f32 1.442695, %v1415_v53 }
 0x464   :  { %v701_v56 = vpop.xlane.xlu0 %700  ;;  %v783_v57 = vsel %vm671_vm3, %v1084_v54, 0.0 }
 0x465   :  { %1089 = vpow2.f32 %v748_v55  ;;  %v1420_v58 = vsub.f32 %v1350_v0, %v701_v56  ;;  %784 = vadd.xlane.f32.xlu0 %v783_v57  ;;  %v698_v59 = vpop.xlane.xlu1 %697 }
 0x466   :  { %v1423_v60 = vsub.f32 %v1352_v2, %v698_v59 }
 0x467   :  { %v1086_v62 = vpop.eup %1085  ;;  %v754_v61 = vmul.f32 1.442695, %v1420_v58 }
 0x468   :  { %v752_v63 = vmul.f32 1.442695, %v1423_v60  ;;  %v780_v1 = vsel %vm671_vm3, %v1086_v62, 0.0 }
 0x469   :  { %1091 = vpow2.f32 %v754_v61  ;;  %781 = vadd.xlane.f32.xlu1 %v780_v1 }
 0x46a   :  { %1093 = vpow2.f32 %v752_v63 }
 0x46b   :  { %v1088_v3 = vpop.eup %1087 }
 0x46c   :  { %v707_v4 = vpop.xlane.xlu0 %706  ;;  %v789_v0 = vsel %vm671_vm3, %v1088_v3, 0.0 }
 0x46d   :  { %v1430_v5 = vsub.f32 %v1358_v6, %v707_v4  ;;  %790 = vadd.xlane.f32.xlu0 %v789_v0  ;;  %v704_v2 = vpop.xlane.xlu1 %703 }
 0x46e   :  { %v1433_v7 = vsub.f32 %v1360_v8, %v704_v2 }
 0x46f   :  { %v1090_v9 = vpop.eup %1089  ;;  %v758_v10 = vmul.f32 1.442695, %v1430_v5 }
 0x470   :  { %v756_v11 = vmul.f32 1.442695, %v1433_v7  ;;  %v786_v13 = vsel %vm671_vm3, %v1090_v9, 0.0 }
 0x471   :  { %1095 = vpow2.f32 %v758_v10  ;;  %787 = vadd.xlane.f32.xlu1 %v786_v13 }
 0x472   :  { %1097 = vpow2.f32 %v756_v11 }
 0x473   :  { %v1092_v15 = vpop.eup %1091 }
 0x474   :  { %v1094_v16 = vpop.eup %1093  ;;  %v713_v17 = vpop.xlane.xlu0 %712  ;;  %v795_v6 = vsel %vm671_vm3, %v1092_v15, 0.0 }
 0x475   :  { %v1440_v19 = vsub.f32 %v1366_v12, %v713_v17  ;;  %796 = vadd.xlane.f32.xlu0 %v795_v6  ;;  %v710_v8 = vpop.xlane.xlu1 %709  ;;  %v792_v21 = vsel %vm671_vm3, %v1094_v16, 0.0 }
 0x476   :  { %v1444_v22 = vsub.f32 %v1368_v14, %v710_v8  ;;  %793 = vadd.xlane.f32.xlu1 %v792_v21 }
 0x477   :  { %v762_v23 = vmul.f32 1.442695, %v1440_v19 }
 0x478   :  { %v760_v25 = vmul.f32 1.442695, %v1444_v22 }
 0x479   :  { %1099 = vpow2.f32 %v762_v23 }
 0x47a   :  { %1101 = vpow2.f32 %v760_v25 }
 0x47b   :  { %v1096_v27 = vpop.eup %1095 }
 0x47c   :  { %v1098_v28 = vpop.eup %1097  ;;  %v719_v29 = vpop.xlane.xlu0 %718  ;;  %v801_v12 = vsel %vm671_vm3, %v1096_v27, 0.0 }
 0x47d   :  { %v1450_v31 = vsub.f32 %v1374_v18, %v719_v29  ;;  %802 = vadd.xlane.f32.xlu0 %v801_v12  ;;  %v716_v32 = vpop.xlane.xlu1 %715  ;;  %v798_v14 = vsel %vm671_vm3, %v1098_v28, 0.0 }
 0x47e   :  { %v1454_v34 = vsub.f32 %v1376_v20, %v716_v32  ;;  %799 = vadd.xlane.f32.xlu1 %v798_v14 }
 0x47f   :  { %v766_v35 = vmul.f32 1.442695, %v1450_v31 }
 0x480   :  { %v764_v36 = vmul.f32 1.442695, %v1454_v34 }
 0x481   :  { %1103 = vpow2.f32 %v766_v35 }
 0x482   :  { %1105 = vpow2.f32 %v764_v36 }
 0x483   :  { %v1100_v37 = vpop.eup %1099 }
 0x484   :  { %v1102_v38 = vpop.eup %1101  ;;  %v807_v40 = vsel %vm671_vm3, %v1100_v37, 0.0 }
 0x485   :  { %808 = vadd.xlane.f32.xlu0 %v807_v40  ;;  %v804_v18 = vsel %vm671_vm3, %v1102_v38, 0.0 }
 0x486   :  { %805 = vadd.xlane.f32.xlu1 %v804_v18 }
 0x48b   :  { %v1104_v41 = vpop.eup %1103 }
 0x48c   :  { %v1106_v42 = vpop.eup %1105  ;;  %v813_v20 = vsel %vm671_vm3, %v1104_v41, 0.0 }
 0x48d   :  { %814 = vadd.xlane.f32.xlu0 %v813_v20  ;;  %v810_v44 = vsel %vm671_vm3, %v1106_v42, 0.0 }
 0x48e   :  { %811 = vadd.xlane.f32.xlu1 %v810_v44 }
 0x4e2   :  { %v773_v45 = vpop.xlane.xlu0 %772 }
 0x4e3   :  { %1107 = vlog2.f32 %v773_v45  ;;  %v770_v46 = vpop.xlane.xlu1 %769 }
 0x4e4   :  { %1109 = vlog2.f32 %v770_v46 }
 0x4ea   :  { %v779_v47 = vpop.xlane.xlu0 %778 }
 0x4eb   :  { %1111 = vlog2.f32 %v779_v47 }
 0x4ed   :  { %v1108_v49 = vpop.eup %1107 }
 0x4ee   :  { %v1110_v50 = vpop.eup %1109  ;;  %v819_v51 = vmul.f32 0.6931472, %v1108_v49  ;;  %v776_v52 = vpop.xlane.xlu1 %775 }
 0x4ef   :  { %v817_v54 = vmul.f32 0.6931472, %v1110_v50  ;;  %1113 = vlog2.f32 %v776_v52 }
 0x4f0   :  { %v849_v55 = vsub.f32 %v1383_v24, %v819_v51 }
 0x4f1   :  { %v848_v56 = vsub.f32 %v1386_v26, %v817_v54 }
 0x4f2   :  { %865 = vst.msk [vmem:[%s1549_s7 + $0x8] sm:$0xff] %vm671_vm3, %v849_v55  ;;  %v785_v57 = vpop.xlane.xlu0 %784 }
 0x4f3   :  { %864 = vst.msk [vmem:[%s1549_s7] sm:$0xff] %vm671_vm3, %v848_v56  ;;  %1115 = vlog2.f32 %v785_v57 }
 0x4f5   :  { %v1112_v59 = vpop.eup %1111 }
 0x4f6   :  { %v823_v62 = vmul.f32 0.6931472, %v1112_v59  ;;  %v782_v61 = vpop.xlane.xlu1 %781 }
 0x4f7   :  { %1117 = vlog2.f32 %v782_v61 }
 0x4f8   :  { %v851_v24 = vsub.f32 %v1391_v30, %v823_v62 }
 0x4f9   :  { %v1114_v63 = vpop.eup %1113 }
 0x4fa   :  { %867 = vst.msk [vmem:[%s1549_s7 + $0x18] sm:$0xff] %vm671_vm3, %v851_v24  ;;  %v821_v26 = vmul.f32 0.6931472, %v1114_v63  ;;  %v791_v1 = vpop.xlane.xlu0 %790 }
 0x4fb   :  { %1119 = vlog2.f32 %v791_v1 }
 0x4fc   :  { %v850_v3 = vsub.f32 %v1395_v33, %v821_v26 }
 0x4fd   :  { %v1116_v4 = vpop.eup %1115 }
 0x4fe   :  { %866 = vst.msk [vmem:[%s1549_s7 + $0x10] sm:$0xff] %vm671_vm3, %v850_v3  ;;  %v827_v0 = vmul.f32 0.6931472, %v1116_v4  ;;  %v788_v2 = vpop.xlane.xlu1 %787 }
 0x4ff   :  { %1121 = vlog2.f32 %v788_v2 }
 0x500   :  { %v853_v30 = vsub.f32 %v1400_v39, %v827_v0 }
 0x501   :  { %v1118_v9 = vpop.eup %1117 }
 0x502   :  { %869 = vst.msk [vmem:[%s1549_s7 + $0x28] sm:$0xff] %vm671_vm3, %v853_v30  ;;  %v825_v10 = vmul.f32 0.6931472, %v1118_v9  ;;  %v797_v11 = vpop.xlane.xlu0 %796 }
 0x503   :  { %1123 = vlog2.f32 %v797_v11  ;;  %v794_v33 = vpop.xlane.xlu1 %793 }
 0x504   :  { %v852_v13 = vsub.f32 %v1405_v43, %v825_v10  ;;  %1125 = vlog2.f32 %v794_v33 }
 0x505   :  { %v1120_v15 = vpop.eup %1119 }
 0x506   :  { %868 = vst.msk [vmem:[%s1549_s7 + $0x20] sm:$0xff] %vm671_vm3, %v852_v13  ;;  %v831_v39 = vmul.f32 0.6931472, %v1120_v15 }
 0x508   :  { %v855_v16 = vsub.f32 %v1410_v48, %v831_v39 }
 0x509   :  { %v1122_v17 = vpop.eup %1121 }
 0x50a   :  { %871 = vst.msk [vmem:[%s1549_s7 + $0x38] sm:$0xff] %vm671_vm3, %v855_v16  ;;  %v829_v6 = vmul.f32 0.6931472, %v1122_v17  ;;  %v803_v8 = vpop.xlane.xlu0 %802 }
 0x50b   :  { %1127 = vlog2.f32 %v803_v8  ;;  %v800_v43 = vpop.xlane.xlu1 %799 }
 0x50c   :  { %v854_v21 = vsub.f32 %v1415_v53, %v829_v6  ;;  %1129 = vlog2.f32 %v800_v43 }
 0x50d   :  { %v1124_v23 = vpop.eup %1123 }
 0x50e   :  { %v1126_v25 = vpop.eup %1125  ;;  %870 = vst.msk [vmem:[%s1549_s7 + $0x30] sm:$0xff] %vm671_vm3, %v854_v21  ;;  %v835_v48 = vmul.f32 0.6931472, %v1124_v23 }
 0x50f   :  { %v833_v27 = vmul.f32 0.6931472, %v1126_v25 }
 0x510   :  { %v857_v28 = vsub.f32 %v1420_v58, %v835_v48 }
 0x511   :  { %v856_v29 = vsub.f32 %v1423_v60, %v833_v27 }
 0x512   :  { %873 = vst.msk [vmem:[%s1549_s7 + $0x48] sm:$0xff] %vm671_vm3, %v857_v28  ;;  %v809_v53 = vpop.xlane.xlu0 %808 }
 0x513   :  { %872 = vst.msk [vmem:[%s1549_s7 + $0x40] sm:$0xff] %vm671_vm3, %v856_v29  ;;  %1131 = vlog2.f32 %v809_v53  ;;  %v806_v12 = vpop.xlane.xlu1 %805 }
 0x514   :  { %1133 = vlog2.f32 %v806_v12 }
 0x515   :  { %v1128_v32 = vpop.eup %1127 }
 0x516   :  { %v1130_v14 = vpop.eup %1129  ;;  %v839_v35 = vmul.f32 0.6931472, %v1128_v32 }
 0x517   :  { %v837_v58 = vmul.f32 0.6931472, %v1130_v14 }
 0x518   :  { %v859_v60 = vsub.f32 %v1430_v5, %v839_v35 }
 0x519   :  { %v858_v36 = vsub.f32 %v1433_v7, %v837_v58 }
 0x51a   :  { %875 = vst.msk [vmem:[%s1549_s7 + $0x58] sm:$0xff] %vm671_vm3, %v859_v60  ;;  %v815_v37 = vpop.xlane.xlu0 %814 }
 0x51b   :  { %874 = vst.msk [vmem:[%s1549_s7 + $0x50] sm:$0xff] %vm671_vm3, %v858_v36  ;;  %1135 = vlog2.f32 %v815_v37  ;;  %v812_v38 = vpop.xlane.xlu1 %811 }
 0x51c   :  { %1137 = vlog2.f32 %v812_v38 }
 0x51d   :  { %v1132_v40 = vpop.eup %1131 }
 0x51e   :  { %v1134_v18 = vpop.eup %1133  ;;  %v843_v41 = vmul.f32 0.6931472, %v1132_v40 }
 0x51f   :  { %v841_v5 = vmul.f32 0.6931472, %v1134_v18 }
 0x520   :  { %v861_v7 = vsub.f32 %v1440_v19, %v843_v41 }
 0x521   :  { %v860_v42 = vsub.f32 %v1444_v22, %v841_v5 }
 0x522   :  { %877 = vst.msk [vmem:[%s1549_s7 + $0x68] sm:$0xff] %vm671_vm3, %v861_v7 }
 0x523   :  { %876 = vst.msk [vmem:[%s1549_s7 + $0x60] sm:$0xff] %vm671_vm3, %v860_v42 }
 0x525   :  { %v1136_v20 = vpop.eup %1135 }
 0x526   :  { %v1138_v44 = vpop.eup %1137  ;;  %v847_v45 = vmul.f32 0.6931472, %v1136_v20 }
 0x527   :  { %v845_v46 = vmul.f32 0.6931472, %v1138_v44 }
 0x528   :  { %v863_v47 = vsub.f32 %v1450_v31, %v847_v45 }
 0x529   :  { %v862_v19 = vsub.f32 %v1454_v34, %v845_v46 }
 0x52a   :  { %879 = vst.msk [vmem:[%s1549_s7 + $0x78] sm:$0xff] %vm671_vm3, %v863_v47 }
 0x52b   :  { %878 = vst.msk [vmem:[%s1549_s7 + $0x70] sm:$0xff] %vm671_vm3, %v862_v19 }

</bundles_post_ra>
